<compile_context>
chip_gen: v7x
topology: tpu7x:2x2x1
jax: 0.10.0
libtpu: 0.0.40
codegen_flags: <defaults>
</compile_context>

<pallas_src>
import functools
from typing import NamedTuple

import jax
import jax.numpy as jnp
from jax.experimental import pallas as pl
from jax.experimental.pallas import tpu as pltpu

_MIB = 1024 * 1024
_HAS_BUFFERED = hasattr(pl, "Buffered")


def _cdiv(a: int, b: int) -> int:
    return -(-a // b)


def _round_up(x: int, m: int) -> int:
    return _cdiv(x, m) * m


def _pad2(a, rows: int, cols: int):
    pr, pc = rows - a.shape[0], cols - a.shape[1]
    if pr == 0 and pc == 0:
        return a
    return jnp.pad(a, ((0, pr), (0, pc)))


def _device_kind() -> str:
    try:
        return jax.devices()[0].device_kind.lower()
    except Exception:
        return ""


def _physical_vmem_bytes() -> int:
    try:
        v = getattr(pltpu.get_tpu_info(), "vmem_capacity_bytes", None)
        if v:
            return int(v)
    except Exception:
        pass
    return 64 * _MIB  # conservative (v7x-sized) fallback


class Plan(NamedTuple):
    O: int            # logical num_outputs (for the final slice)
    TM: int           # batch tile rows
    TH: int           # hidden tile cols (== H_pad when weights are resident)
    n_b: int          # batch grid size
    n_h: int          # hidden grid size (1 when weights are resident)
    B_pad: int
    K_pad: int
    H_pad: int
    O_pad: int
    bf16_epilogue: bool
    use_hsplit: bool
    vmem_limit: int


def make_plan(B: int, K: int, H: int, O: int, out_dtype=jnp.float32,
              block_rows: int | None = None) -> Plan:
    kind = _device_kind()
    bf16_epilogue = ("v6" in kind) or ("v7" in kind) or ("7x" in kind)
    two_cores = ("v7" in kind) or ("7x" in kind)          # v7x: 2 TCs/chip
    vmem_bytes = _physical_vmem_bytes()
    vmem_budget = int(0.85 * vmem_bytes)                  # Mosaic scratch headroom

    out_bytes = jnp.dtype(out_dtype).itemsize
    act_bytes = 2 if bf16_epilogue else 4

    # Lane-dense feature padding (multiples of 128). Dims in (128, 256] land on
    # 256, filling the full 256-wide v6e/v7x MXU; 128 matches v5e exactly.
    K_pad = _round_up(K, 128)
    O_pad = _round_up(O, 128)
    H_pad = _round_up(H, 128)

    # Resident-weights vs H-split decision (bf16, single-buffered).
    w_bytes = (K_pad * H_pad + H_pad * O_pad) * 2
    use_hsplit = w_bytes > vmem_budget // 3

    if use_hsplit:
        # Pick TH so double-buffered streamed w1/w2 slabs use <= ~1/2 budget.
        per_col = (K_pad + O_pad) * 2                     # bf16 bytes per hidden col
        TH = ((vmem_budget // 2) // (2 * per_col)) // 128 * 128
        TH = max(128, min(TH, H_pad))
        H_pad = _round_up(H, TH)                          # exact: padded cols are 0
    else:
        TH = H_pad
    n_h = H_pad // TH

    def vmem_est(tm: int) -> int:
        e = (2 * tm * K_pad * 2                # x tiles (bf16, double-buffered)
             + 2 * tm * O_pad * out_bytes      # out tiles (double-buffered)
             + tm * TH * 4                     # fc1 f32 dot result
             + tm * TH * act_bytes)            # activated hidden
        if use_hsplit:
            e += 2 * (K_pad * TH + TH * O_pad) * 2   # streamed weights (2 bufs)
            e += tm * O_pad * 4                      # f32 output accumulator
        else:
            e += (K_pad * TH + TH * O_pad) * 2       # resident weights (1 buf)
        e += 2 * (TH + O_pad) * 4                    # biases (small)
        return e

    if block_rows is None:
        # Bigger batch tiles on 128 MiB-VMEM parts (v5e/v6e); 512 otherwise.
        block_rows = 1024 if vmem_bytes >= 96 * _MIB else 512

    TM = _round_up(min(block_rows, max(B, 1)), 16)
    while TM > 16 and vmem_est(TM) > vmem_budget:
        TM = _round_up(TM // 2, 16)

    n_b = _cdiv(B, TM)
    if two_cores and n_b == 1 and B > 16:
        n_b = 2                                   # keep both v7x TensorCores busy
    TM = _round_up(_cdiv(B, n_b), 16)
    B_pad = n_b * TM

    vmem_limit = int(min(max(2 * vmem_est(TM), 32 * _MIB), vmem_budget))
    return Plan(O=O, TM=TM, TH=TH, n_b=n_b, n_h=n_h, B_pad=B_pad,
                K_pad=K_pad, H_pad=H_pad, O_pad=O_pad,
                bf16_epilogue=bf16_epilogue, use_hsplit=use_hsplit,
                vmem_limit=vmem_limit)


def prepare_mlp_params(w1, b1, w2, b2, plan: Plan):
    """One-time pad + bf16 cast of parameters (hoisted out of the hot path)."""
    b1 = jnp.asarray(b1).reshape(1, -1)
    b2 = jnp.asarray(b2).reshape(1, -1)
    b1_dtype = jnp.bfloat16 if plan.bf16_epilogue else jnp.float32
    w1p = _pad2(jnp.asarray(w1), plan.K_pad, plan.H_pad).astype(jnp.bfloat16)
    w2p = _pad2(jnp.asarray(w2), plan.H_pad, plan.O_pad).astype(jnp.bfloat16)
    b1p = _pad2(b1.astype(b1_dtype), 1, plan.H_pad)
    b2p = _pad2(b2.astype(jnp.float32), 1, plan.O_pad)
    return w1p, b1p, w2p, b2p


# ----------------------------- kernels --------------------------------------
def _mlp_kernel_resident(x_ref, w1_ref, b1_ref, w2_ref, b2_ref, o_ref, *,
                         bf16_epilogue: bool):
    # fc1: bf16 operands on the MXU, f32 accumulation.
    h = jnp.dot(x_ref[...], w1_ref[...], preferred_element_type=jnp.float32)
    if bf16_epilogue:              # v6e/v7x: bf16 VPU -> halve epilogue cost
        h = jnp.maximum(h.astype(jnp.bfloat16) + b1_ref[...], 0)
    else:                          # v5e/older: f32-only VPU
        h = jnp.maximum(h + b1_ref[...], 0.0)
    out = jnp.dot(h.astype(w2_ref.dtype), w2_ref[...],
                  preferred_element_type=jnp.float32)
    o_ref[...] = (out + b2_ref[...]).astype(o_ref.dtype)


def _mlp_kernel_hsplit(x_ref, w1_ref, b1_ref, w2_ref, b2_ref, o_ref, acc_ref, *,
                       bf16_epilogue: bool):
    h_idx = pl.program_id(1)

    @pl.when(h_idx == 0)
    def _init():
        acc_ref[...] = jnp.zeros_like(acc_ref)

    h = jnp.dot(x_ref[...], w1_ref[...], preferred_element_type=jnp.float32)
    if bf16_epilogue:
        h = jnp.maximum(h.astype(jnp.bfloat16) + b1_ref[...], 0)
    else:
        h = jnp.maximum(h + b1_ref[...], 0.0)
    acc_ref[...] += jnp.dot(h.astype(w2_ref.dtype), w2_ref[...],
                            preferred_element_type=jnp.float32)

    @pl.when(h_idx == pl.num_programs(1) - 1)
    def _finalize():
        o_ref[...] = (acc_ref[...] + b2_ref[...]).astype(o_ref.dtype)


# --------------------------- pallas_call wrapper -----------------------------
def _invariant_spec(shape, index_map, single_buffer: bool):
    # Grid-invariant operand: single-buffer it (no re-DMA happens anyway).
    if single_buffer and _HAS_BUFFERED:
        return pl.BlockSpec(shape, index_map, pipeline_mode=pl.Buffered(1))
    return pl.BlockSpec(shape, index_map)


@functools.partial(jax.jit, static_argnames=("plan", "single_buffer_weights"))
def _mlp_call(x, w1p, b1p, w2p, b2p, *, plan: Plan, single_buffer_weights: bool):
    p = plan
    B, K = x.shape
    out_dtype = x.dtype

    # Pad / cast x only when actually needed (skip the extra HBM pass).
    xp = x
    if xp.dtype != jnp.bfloat16:
        xp = xp.astype(jnp.bfloat16)
    if (B, K) != (p.B_pad, p.K_pad):
        xp = jnp.pad(xp, ((0, p.B_pad - B), (0, p.K_pad - K)))

    if not p.use_hsplit:
        grid = (p.n_b,)
        in_specs = [
            pl.BlockSpec((p.TM, p.K_pad), lambda i: (i, 0)),            # x tile
            _invariant_spec((p.K_pad, p.H_pad), lambda i: (0, 0),
                            single_buffer_weights),                      # w1
            _invariant_spec((1, p.H_pad), lambda i: (0, 0),
                            single_buffer_weights),                      # b1
            _invariant_spec((p.H_pad, p.O_pad), lambda i: (0, 0),
                            single_buffer_weights),                      # w2
            _invariant_spec((1, p.O_pad), lambda i: (0, 0),
                            single_buffer_weights),                      # b2
        ]
        out_specs = pl.BlockSpec((p.TM, p.O_pad), lambda i: (i, 0))
        scratch_shapes = []
        dim_sem = ("parallel",)
        kernel = functools.partial(_mlp_kernel_resident,
                                   bf16_epilogue=p.bf16_epilogue)
    else:
        grid = (p.n_b, p.n_h)                       # H axis last, "arbitrary"
        in_specs = [
            pl.BlockSpec((p.TM, p.K_pad), lambda i, h: (i, 0)),   # reused over h
            pl.BlockSpec((p.K_pad, p.TH), lambda i, h: (0, h)),   # streamed w1 cols
            pl.BlockSpec((1, p.TH), lambda i, h: (0, h)),         # streamed b1
            pl.BlockSpec((p.TH, p.O_pad), lambda i, h: (h, 0)),   # streamed w2 rows
            _invariant_spec((1, p.O_pad), lambda i, h: (0, 0),
                            single_buffer_weights),               # b2
        ]
        out_specs = pl.BlockSpec((p.TM, p.O_pad), lambda i, h: (i, 0))
        scratch_shapes = [pltpu.VMEM((p.TM, p.O_pad), jnp.float32)]
        dim_sem = ("parallel", "arbitrary")
        kernel = functools.partial(_mlp_kernel_hsplit,
                                   bf16_epilogue=p.bf16_epilogue)

    out_padded = pl.pallas_call(
        kernel,
        out_shape=jax.ShapeDtypeStruct((p.B_pad, p.O_pad), out_dtype),
        grid_spec=pltpu.PrefetchScalarGridSpec(
            num_scalar_prefetch=0,
            grid=grid,
            in_specs=in_specs,
            out_specs=out_specs,
            scratch_shapes=scratch_shapes,
        ),
        compiler_params=pltpu.CompilerParams(
            dimension_semantics=dim_sem,
            vmem_limit_bytes=p.vmem_limit,
        ),
    )(xp, w1p, b1p, w2p, b2p)
    return out_padded


def mlp_forward(x, w1p, b1p, w2p, b2p, plan: Plan):
    """x: (B, num_inputs) -> (B, num_outputs); params from prepare_mlp_params."""
    try:
        out = _mlp_call(x, w1p, b1p, w2p, b2p, plan=plan,
                        single_buffer_weights=True)
    except Exception:
        # Fallback for JAX/Mosaic versions that reject pl.Buffered(1) on a
        # grid-invariant input: default double-buffering (VMEM cost only).
        out = _mlp_call(x, w1p, b1p, w2p, b2p, plan=plan,
                        single_buffer_weights=False)
    return out[:x.shape[0], :plan.O]


def init_mlp_params(key, num_inputs, num_heads, num_outputs, dtype=jnp.float32):
    # torch.nn.Linear default init: U(-1/sqrt(fan_in), 1/sqrt(fan_in)).
    k1, k2, k3, k4 = jax.random.split(key, 4)
    bound1 = 1.0 / (num_inputs ** 0.5)
    bound2 = 1.0 / (num_heads ** 0.5)
    w1 = jax.random.uniform(k1, (num_inputs, num_heads), dtype, -bound1, bound1)
    b1 = jax.random.uniform(k2, (1, num_heads), dtype, -bound1, bound1)
    w2 = jax.random.uniform(k3, (num_heads, num_outputs), dtype, -bound2, bound2)
    b2 = jax.random.uniform(k4, (1, num_outputs), dtype, -bound2, bound2)
    return w1, b1, w2, b2


if __name__ == "__main__":
    # state -> fc1(num_inputs -> num_heads) -> ReLU -> fc2(num_heads -> num_outputs)
    batch, num_inputs, num_heads, num_outputs = 8, 16, 32, 8

    key = jax.random.PRNGKey(0)
    kx, kp = jax.random.split(key)
    x = jax.random.normal(kx, (batch, num_inputs), jnp.float32)
    w1, b1, w2, b2 = init_mlp_params(kp, num_inputs, num_heads, num_outputs)

    plan = make_plan(batch, num_inputs, num_heads, num_outputs, x.dtype)
    params = prepare_mlp_params(w1, b1, w2, b2, plan)  # one-time pad + bf16 cast

    out = jax.block_until_ready(mlp_forward(x, *params, plan))

    # Reference in plain JAX (f32); kernel uses bf16 MXU operands with f32
    # accumulation, so allow bf16-level tolerance.
    ref = jnp.maximum(x @ w1 + b1, 0.0) @ w2 + b2
    assert out.shape == (batch, num_outputs)
    assert jnp.allclose(out, ref, atol=5e-2, rtol=5e-2), float(
        jnp.max(jnp.abs(out - ref)))

    print("KERNEL_OK")
</pallas_src>

<mosaic_0001>
module attributes {stable_mosaic.version = 11 : i64} {
  func.func @_mlp_kernel_resident(%arg0: i32, %arg1: memref<16x128xbf16, #tpu.memory_space<vmem>>, %arg2: memref<128x128xbf16, #tpu.memory_space<vmem>>, %arg3: memref<1x128xf32, #tpu.memory_space<vmem>>, %arg4: memref<128x128xbf16, #tpu.memory_space<vmem>>, %arg5: memref<1x128xf32, #tpu.memory_space<vmem>>, %arg6: memref<16x128xf32, #tpu.memory_space<vmem>>) attributes {dimension_semantics = [#tpu.dimension_semantics<parallel>], iteration_bounds = array<i64: 1>, scalar_prefetch = 0 : i64, scratch_operands = 0 : i64, tpu.core_type = #tpu.core_type<tc>, window_params = [{transform_indices = @transform_0, window_bounds = array<i64: 16, 128>}, {pipeline_mode = #tpu.pipeline_mode<synchronous>, transform_indices = @transform_1, window_bounds = array<i64: 128, 128>}, {pipeline_mode = #tpu.pipeline_mode<synchronous>, transform_indices = @transform_2, window_bounds = array<i64: 1, 128>}, {pipeline_mode = #tpu.pipeline_mode<synchronous>, transform_indices = @transform_3, window_bounds = array<i64: 128, 128>}, {pipeline_mode = #tpu.pipeline_mode<synchronous>, transform_indices = @transform_4, window_bounds = array<i64: 1, 128>}, {transform_indices = @transform_5, window_bounds = array<i64: 16, 128>}]} {
    %c0 = arith.constant 0 : index
    %c0_0 = arith.constant 0 : index
    %0 = vector.load %arg1[%c0, %c0_0] : memref<16x128xbf16, #tpu.memory_space<vmem>>, vector<16x128xbf16>
    %c0_1 = arith.constant 0 : index
    %c0_2 = arith.constant 0 : index
    %1 = vector.load %arg2[%c0_1, %c0_2] : memref<128x128xbf16, #tpu.memory_space<vmem>>, vector<128x128xbf16>
    %cst = arith.constant dense<0.000000e+00> : vector<16x128xf32>
    %2 = tpu.matmul %0, %1, %cst {dimension_numbers = #tpu.dot_dimension_numbers<[1], [0], [0], [1], [0, 0, 1, 1], [], []>} : vector<16x128xbf16>, vector<128x128xbf16>, vector<16x128xf32> -> vector<16x128xf32>
    %c0_3 = arith.constant 0 : index
    %c0_4 = arith.constant 0 : index
    %3 = vector.load %arg3[%c0_3, %c0_4] : memref<1x128xf32, #tpu.memory_space<vmem>>, vector<1x128xf32>
    %4 = vector.broadcast %3 : vector<1x128xf32> to vector<16x128xf32>
    %5 = arith.addf %2, %4 : vector<16x128xf32>
    %cst_5 = arith.constant 0.000000e+00 : f32
    %6 = vector.broadcast %cst_5 : f32 to vector<16x128xf32>
    %7 = arith.maximumf %5, %6 : vector<16x128xf32>
    %8 = arith.truncf %7 : vector<16x128xf32> to vector<16x128xbf16>
    %c0_6 = arith.constant 0 : index
    %c0_7 = arith.constant 0 : index
    %9 = vector.load %arg4[%c0_6, %c0_7] : memref<128x128xbf16, #tpu.memory_space<vmem>>, vector<128x128xbf16>
    %cst_8 = arith.constant dense<0.000000e+00> : vector<16x128xf32>
    %10 = tpu.matmul %8, %9, %cst_8 {dimension_numbers = #tpu.dot_dimension_numbers<[1], [0], [0], [1], [0, 0, 1, 1], [], []>} : vector<16x128xbf16>, vector<128x128xbf16>, vector<16x128xf32> -> vector<16x128xf32>
    %c0_9 = arith.constant 0 : index
    %c0_10 = arith.constant 0 : index
    %11 = vector.load %arg5[%c0_9, %c0_10] : memref<1x128xf32, #tpu.memory_space<vmem>>, vector<1x128xf32>
    %12 = vector.broadcast %11 : vector<1x128xf32> to vector<16x128xf32>
    %13 = arith.addf %10, %12 : vector<16x128xf32>
    %c0_11 = arith.constant 0 : index
    %c0_12 = arith.constant 0 : index
    %14 = vector.load %arg6[%c0_11, %c0_12] : memref<16x128xf32, #tpu.memory_space<vmem>>, vector<16x128xf32>
    tpu.vector_store %arg6[%c0_11, %c0_12], %13 {strides = array<i32>} : memref<16x128xf32, #tpu.memory_space<vmem>>, vector<16x128xf32>,
    return
  }
  func.func @transform_0(%arg0: i32) -> (i32, i32) {
    %c0_i32 = arith.constant 0 : i32
    %c0_i32_0 = arith.constant 0 : i32
    return %arg0, %c0_i32 : i32, i32
  }
  func.func @transform_1(%arg0: i32) -> (i32, i32) {
    %c0_i32 = arith.constant 0 : i32
    %c0_i32_0 = arith.constant 0 : i32
    %c0_i32_1 = arith.constant 0 : i32
    return %c0_i32, %c0_i32_0 : i32, i32
  }
  func.func @transform_2(%arg0: i32) -> (i32, i32) {
    %c0_i32 = arith.constant 0 : i32
    %c0_i32_0 = arith.constant 0 : i32
    %c0_i32_1 = arith.constant 0 : i32
    return %c0_i32, %c0_i32_0 : i32, i32
  }
  func.func @transform_3(%arg0: i32) -> (i32, i32) {
    %c0_i32 = arith.constant 0 : i32
    %c0_i32_0 = arith.constant 0 : i32
    %c0_i32_1 = arith.constant 0 : i32
    return %c0_i32, %c0_i32_0 : i32, i32
  }
  func.func @transform_4(%arg0: i32) -> (i32, i32) {
    %c0_i32 = arith.constant 0 : i32
    %c0_i32_0 = arith.constant 0 : i32
    %c0_i32_1 = arith.constant 0 : i32
    return %c0_i32, %c0_i32_0 : i32, i32
  }
  func.func @transform_5(%arg0: i32) -> (i32, i32) {
    %c0_i32 = arith.constant 0 : i32
    %c0_i32_0 = arith.constant 0 : i32
    return %arg0, %c0_i32 : i32, i32
  }
}

module attributes {stable_mosaic.version = 11 : i64} {
  func.func @_mlp_kernel_resident(%arg0: i32, %arg1: memref<16x128xbf16, #tpu.memory_space<vmem>>, %arg2: memref<128x128xbf16, #tpu.memory_space<vmem>>, %arg3: memref<1x128xf32, #tpu.memory_space<vmem>>, %arg4: memref<128x128xbf16, #tpu.memory_space<vmem>>, %arg5: memref<1x128xf32, #tpu.memory_space<vmem>>, %arg6: memref<16x128xf32, #tpu.memory_space<vmem>>) attributes {dimension_semantics = [#tpu.dimension_semantics<parallel>], iteration_bounds = array<i64: 1>, scalar_prefetch = 0 : i64, scratch_operands = 0 : i64, tpu.core_type = #tpu.core_type<tc>, window_params = [{transform_indices = @transform_0, window_bounds = array<i64: 16, 128>}, {pipeline_mode = #tpu.pipeline_mode<synchronous>, transform_indices = @transform_1, window_bounds = array<i64: 128, 128>}, {pipeline_mode = #tpu.pipeline_mode<synchronous>, transform_indices = @transform_2, window_bounds = array<i64: 1, 128>}, {pipeline_mode = #tpu.pipeline_mode<synchronous>, transform_indices = @transform_3, window_bounds = array<i64: 128, 128>}, {pipeline_mode = #tpu.pipeline_mode<synchronous>, transform_indices = @transform_4, window_bounds = array<i64: 1, 128>}, {transform_indices = @transform_5, window_bounds = array<i64: 16, 128>}]} {
    %c0 = arith.constant 0 : index
    %c0_0 = arith.constant 0 : index
    %0 = vector.load %arg1[%c0, %c0_0] : memref<16x128xbf16, #tpu.memory_space<vmem>>, vector<16x128xbf16>
    %c0_1 = arith.constant 0 : index
    %c0_2 = arith.constant 0 : index
    %1 = vector.load %arg2[%c0_1, %c0_2] : memref<128x128xbf16, #tpu.memory_space<vmem>>, vector<128x128xbf16>
    %cst = arith.constant dense<0.000000e+00> : vector<16x128xf32>
    %2 = tpu.matmul %0, %1, %cst {dimension_numbers = #tpu.dot_dimension_numbers<[1], [0], [0], [1], [0, 0, 1, 1], [], []>} : vector<16x128xbf16>, vector<128x128xbf16>, vector<16x128xf32> -> vector<16x128xf32>
    %c0_3 = arith.constant 0 : index
    %c0_4 = arith.constant 0 : index
    %3 = vector.load %arg3[%c0_3, %c0_4] : memref<1x128xf32, #tpu.memory_space<vmem>>, vector<1x128xf32>
    %4 = vector.broadcast %3 : vector<1x128xf32> to vector<16x128xf32>
    %5 = arith.addf %2, %4 : vector<16x128xf32>
    %cst_5 = arith.constant 0.000000e+00 : f32
    %6 = vector.broadcast %cst_5 : f32 to vector<16x128xf32>
    %7 = arith.maximumf %5, %6 : vector<16x128xf32>
    %8 = arith.truncf %7 : vector<16x128xf32> to vector<16x128xbf16>
    %c0_6 = arith.constant 0 : index
    %c0_7 = arith.constant 0 : index
    %9 = vector.load %arg4[%c0_6, %c0_7] : memref<128x128xbf16, #tpu.memory_space<vmem>>, vector<128x128xbf16>
    %cst_8 = arith.constant dense<0.000000e+00> : vector<16x128xf32>
    %10 = tpu.matmul %8, %9, %cst_8 {dimension_numbers = #tpu.dot_dimension_numbers<[1], [0], [0], [1], [0, 0, 1, 1], [], []>} : vector<16x128xbf16>, vector<128x128xbf16>, vector<16x128xf32> -> vector<16x128xf32>
    %c0_9 = arith.constant 0 : index
    %c0_10 = arith.constant 0 : index
    %11 = vector.load %arg5[%c0_9, %c0_10] : memref<1x128xf32, #tpu.memory_space<vmem>>, vector<1x128xf32>
    %12 = vector.broadcast %11 : vector<1x128xf32> to vector<16x128xf32>
    %13 = arith.addf %10, %12 : vector<16x128xf32>
    %c0_11 = arith.constant 0 : index
    %c0_12 = arith.constant 0 : index
    %14 = vector.load %arg6[%c0_11, %c0_12] : memref<16x128xf32, #tpu.memory_space<vmem>>, vector<16x128xf32>
    tpu.vector_store %arg6[%c0_11, %c0_12], %13 {strides = array<i32>} : memref<16x128xf32, #tpu.memory_space<vmem>>, vector<16x128xf32>,
    return
  }
  func.func @transform_0(%arg0: i32) -> (i32, i32) {
    %c0_i32 = arith.constant 0 : i32
    %c0_i32_0 = arith.constant 0 : i32
    return %arg0, %c0_i32 : i32, i32
  }
  func.func @transform_1(%arg0: i32) -> (i32, i32) {
    %c0_i32 = arith.constant 0 : i32
    %c0_i32_0 = arith.constant 0 : i32
    %c0_i32_1 = arith.constant 0 : i32
    return %c0_i32, %c0_i32_0 : i32, i32
  }
  func.func @transform_2(%arg0: i32) -> (i32, i32) {
    %c0_i32 = arith.constant 0 : i32
    %c0_i32_0 = arith.constant 0 : i32
    %c0_i32_1 = arith.constant 0 : i32
    return %c0_i32, %c0_i32_0 : i32, i32
  }
  func.func @transform_3(%arg0: i32) -> (i32, i32) {
    %c0_i32 = arith.constant 0 : i32
    %c0_i32_0 = arith.constant 0 : i32
    %c0_i32_1 = arith.constant 0 : i32
    return %c0_i32, %c0_i32_0 : i32, i32
  }
  func.func @transform_4(%arg0: i32) -> (i32, i32) {
    %c0_i32 = arith.constant 0 : i32
    %c0_i32_0 = arith.constant 0 : i32
    %c0_i32_1 = arith.constant 0 : i32
    return %c0_i32, %c0_i32_0 : i32, i32
  }
  func.func @transform_5(%arg0: i32) -> (i32, i32) {
    %c0_i32 = arith.constant 0 : i32
    %c0_i32_0 = arith.constant 0 : i32
    return %arg0, %c0_i32 : i32, i32
  }
}

</mosaic_0001>

<bundles_post_ra>
// kernel: _mlp_call.1
= control target key start
LH: loop header
LB: loop body
LE: loop exit
PB: predicated region body
PF: predicated region fallthrough
CT: control target
= control target key end

     0   :  { %10 = vsyncpa [#allocation3], 0  ;;  %s564_s0 = inlined_call_operand.vmem [shape: bf16[16,128], index: 0, kind: input, shape index: {}]   ;;  %s565_s1 = inlined_call_operand.hbm [shape: bf16[128,128], index: 1, kind: input, shape index: {}]   ;;  %s566_s2 = inlined_call_operand.vmem [shape: f32[1,128], index: 2, kind: input, shape index: {}]   ;;  %s567_s3 = inlined_call_operand.hbm [shape: bf16[128,128], index: 3, kind: input, shape index: {}]   ;;  %s568_s4 = inlined_call_operand.vmem [shape: f32[1,128], index: 4, kind: input, shape index: {}]   ;;  %s569_s5 = inlined_call_operand.hbm [shape: f32[16,128], index: 5, kind: output, shape index: {}]  }
   0x1   :  { %11 = vsyncpa [#allocation6], 0 }
   0x2   :  { %12 = vsyncpa [#allocation4], 0  ;;  %s480_s18 = smov [#allocation2]   ;;  %s408_s22 = scalar_lea.hbm %s565_s1, 1024 }
   0x3   :  { %s20_s19 = sshll.u32 %s480_s18, 4  ;;  %p409_p0 = scmp.ne.s32.totalorder %s565_s1, %s408_s22  ;;  %s21_s19 = int_to_ptr.vmem [resolvable:$true] %s20_s19 }
   0x4   :  { %p412_p1 = scmp.lt.u32.totalorder %s408_s22, %s565_s1 }
   0x6   :  { %p414_p2 = pnand %p412_p1, %p409_p0 }
   0x8   :  { %417 = shalt.err (!%p414_p2)
}
   0x9   :  { %s418_s27 = scalar_lea.vmem %s21_s19, 1024  ;;  %p423_p4 = scmp.lt.s32.totalorder %s21_s19, %s21_s19 }
   0xa   :  { %p419_p3 = scmp.ne.s32.totalorder %s21_s19, %s418_s27  ;;  %p424_p5 = scmp.lt.s32.totalorder %s418_s27, %s418_s27 }
   0xc   :  { %p425_p6 = por %p424_p5, %p423_p4 }
   0xe   :  { %p426_p7 = pnand %p425_p6, %p419_p3 }
  0x10   :  { %429 = shalt.err (!%p426_p7)
}
  0x11   :  { %s481_s28 = smov 64   ;;  %s482_s29 = smov 4  }
  0x12   :  { %26 = dma.hbm_to_vmem [thread:$0]  %s565_s1, 1024, %s21_s19, [#allocation3], %s481_s28, %s481_s28, %s482_s29  }
  0x13   :  { %s483_s7 = smov [#allocation5]   ;;  %s430_s11 = scalar_lea.hbm %s567_s3, 1024 }
  0x14   :  { %s34_s8 = sshll.u32 %s483_s7, 4  ;;  %p431_p8 = scmp.ne.s32.totalorder %s567_s3, %s430_s11  ;;  %s35_s8 = int_to_ptr.vmem [resolvable:$true] %s34_s8 }
  0x15   :  { %p434_p9 = scmp.lt.u32.totalorder %s430_s11, %s567_s3 }
  0x17   :  { %p436_p10 = pnand %p434_p9, %p431_p8 }
  0x19   :  { %439 = shalt.err (!%p436_p10)
}
  0x1a   :  { %s440_s16 = scalar_lea.vmem %s35_s8, 1024  ;;  %p445_p12 = scmp.lt.s32.totalorder %s35_s8, %s35_s8 }
  0x1b   :  { %p441_p11 = scmp.ne.s32.totalorder %s35_s8, %s440_s16  ;;  %p446_p13 = scmp.lt.s32.totalorder %s440_s16, %s440_s16 }
  0x1d   :  { %p447_p0 = por %p446_p13, %p445_p12 }
  0x1f   :  { %p448_p1 = pnand %p447_p0, %p441_p11 }
  0x21   :  { %451 = shalt.err (!%p448_p1)
}
  0x22   :  { %40 = dma.hbm_to_vmem [thread:$0]  %s567_s3, 1024, %s35_s8, [#allocation6], %s481_s28, %s481_s28, %s482_s29  }
  0x23   :  { %474 = dma.done.wait [#allocation3], 1024  }
  0x24   :  { %475 = vsyncadd [#allocation3], 4294966272 }
  0x25   :  { %476 = dma.done.wait [#allocation6], 1024  }
  0x26   :  { %477 = vsyncadd [#allocation6], 4294966272  ;;  %v484_v0 = vmov 0.0   ;;  %vm485_vm0 = vmmov 0   ;;  %v391_v1 = vld [vmem:[#allocation2] sm:$0xff]   ;;  %v392_v2 = vld [vmem:[#allocation2 + $0x8] sm:$0xff]  }
  0x27   :  { %342 = vmatprep.subr.bf16.mxu0 %v484_v0  ;;  %358 = vmatprep.mubr.msk.bf16.mxu0 %vm485_vm0, %v484_v0  ;;  %v393_v3 = vld [vmem:[#allocation2 + $0x10] sm:$0xff]   ;;  %v400_v4 = vld [vmem:[#allocation5] sm:$0xff]   ;;  %v394_v5 = vld [vmem:[#allocation2 + $0x18] sm:$0xff]   ;;  %s486_s22 = smov [#allocation7]  }
  0x28   :  { %362 = vmatprep.subr.bf16.mxu1 %v484_v0  ;;  %378 = vmatprep.mubr.msk.bf16.mxu1 %vm485_vm0, %v484_v0  ;;  %v401_v6 = vld [vmem:[#allocation5 + $0x8] sm:$0xff]   ;;  %v395_v7 = vld [vmem:[#allocation2 + $0x20] sm:$0xff]   ;;  %v402_v8 = vld [vmem:[#allocation5 + $0x10] sm:$0xff]   ;;  %s292_s23 = sshll.u32 %s486_s22, 4  ;;  %s293_s23 = int_to_ptr.vmem [resolvable:$true] %s292_s23 }
  0x29   :  { %343 = vmatpush3.bf16.msra.mxu0 %v391_v1  ;;  %363 = vmatpush3.bf16.msra.mxu1 %v400_v4  ;;  %v396_v9 = vld [vmem:[#allocation2 + $0x28] sm:$0xff]   ;;  %v403_v10 = vld [vmem:[#allocation5 + $0x18] sm:$0xff]   ;;  %v397_v11 = vld [vmem:[#allocation2 + $0x30] sm:$0xff]   ;;  %p457_p3 = scmp.lt.s32.totalorder %s293_s23, %s293_s23 }
  0x2a   :  { %344 = vmatprep.subr.bf16.mxu0 %v484_v0  ;;  %364 = vmatprep.subr.bf16.mxu1 %v484_v0  ;;  %v404_v12 = vld [vmem:[#allocation5 + $0x20] sm:$0xff]   ;;  %v398_v13 = vld [vmem:[#allocation2 + $0x38] sm:$0xff]   ;;  %v405_v14 = vld [vmem:[#allocation5 + $0x28] sm:$0xff]  }
  0x2b   :  { %v399_v15 = vld [vmem:[%s564_s0] sm:$0xff]   ;;  %v406_v16 = vld [vmem:[#allocation5 + $0x30] sm:$0xff]   ;;  %v407_v17 = vld [vmem:[#allocation5 + $0x38] sm:$0xff]  }
  0x2c   :  { %v305_v18 = vld [vmem:[%s566_s2] ss:$0 sm:$0xff]  ;;  %s452_s2 = scalar_lea.vmem %s293_s23, 256 }
  0x2d   :  { %345 = vmatpush3.bf16.msra.mxu0 %v392_v2  ;;  %365 = vmatpush3.bf16.msra.mxu1 %v401_v6  ;;  %v315_v28 = vld [vmem:[%s568_s4] ss:$0 sm:$0xff]  ;;  %p453_p2 = scmp.ne.s32.totalorder %s293_s23, %s452_s2  ;;  %p458_p4 = scmp.lt.s32.totalorder %s452_s2, %s452_s2 }
  0x2e   :  { %346 = vmatprep.subr.bf16.mxu0 %v484_v0  ;;  %366 = vmatprep.subr.bf16.mxu1 %v484_v0 }
  0x2f   :  { %p459_p5 = por %p458_p4, %p457_p3 }
  0x31   :  { %347 = vmatpush3.bf16.msra.mxu0 %v393_v3  ;;  %367 = vmatpush3.bf16.msra.mxu1 %v402_v8  ;;  %p460_p6 = pnand %p459_p5, %p453_p2 }
  0x32   :  { %348 = vmatprep.subr.bf16.mxu0 %v484_v0  ;;  %368 = vmatprep.subr.bf16.mxu1 %v484_v0 }
  0x35   :  { %349 = vmatpush3.bf16.msra.mxu0 %v394_v5  ;;  %369 = vmatpush3.bf16.msra.mxu1 %v403_v10 }
  0x36   :  { %350 = vmatprep.subr.bf16.mxu0 %v484_v0  ;;  %370 = vmatprep.subr.bf16.mxu1 %v484_v0 }
  0x39   :  { %351 = vmatpush3.bf16.msra.mxu0 %v395_v7  ;;  %371 = vmatpush3.bf16.msra.mxu1 %v404_v12 }
  0x3a   :  { %352 = vmatprep.subr.bf16.mxu0 %v484_v0  ;;  %372 = vmatprep.subr.bf16.mxu1 %v484_v0 }
  0x3d   :  { %353 = vmatpush3.bf16.msra.mxu0 %v396_v9  ;;  %373 = vmatpush3.bf16.msra.mxu1 %v405_v14 }
  0x3e   :  { %354 = vmatprep.subr.bf16.mxu0 %v484_v0  ;;  %374 = vmatprep.subr.bf16.mxu1 %v484_v0 }
  0x41   :  { %355 = vmatpush3.bf16.msra.mxu0 %v397_v11  ;;  %375 = vmatpush3.bf16.msra.mxu1 %v406_v16 }
  0x42   :  { %356 = vmatprep.subr.bf16.mxu0 %v484_v0  ;;  %376 = vmatprep.subr.bf16.mxu1 %v484_v0 }
  0x45   :  { %357 = vmatpush3.bf16.msra.mxu0 %v398_v13  ;;  %377 = vmatpush3.bf16.msra.mxu1 %v407_v17 }
  0x48   :  { %359 = vmatmul.mubr.bf16.vlgmr.msra.gmra.mrb[0].mxu0 %v399_v15 }
 0x11b   :  { %v163_v19 = vpop.f32.mrb[0].mxu0 }
 0x11c   :  { %v164_v20 = vadd.f32 %v305_v18, %v163_v19  ;;  %v360_v21 = vpop.f32.mrb[1].mxu0 }
 0x11d   :  { %v166_v22 = vpop.f32.mrb[2].mxu0 }
 0x11e   :  { %v167_v23 = vadd.f32 %v305_v18, %v166_v22  ;;  %v361_v24 = vpop.f32.mrb[3].mxu0  ;;  %v170_v25 = vmax.f32 %v164_v20, 0.0 }
 0x120   :  { %v171_v26 = vmax.f32 %v167_v23, 0.0 }
 0x122   :  { %v172_v27 = vpack.c.bf16 %v171_v26, %v170_v25 }
 0x124   :  { %379 = vmatmul.mubr.bf16.vlgmr.msra.gmra.mrb[0].mxu1 %v172_v27 }
 0x1f7   :  { %v278_v29 = vpop.f32.mrb[0].mxu1 }
 0x1f8   :  { %v279_v30 = vadd.f32 %v315_v28, %v278_v29  ;;  %v380_v31 = vpop.f32.mrb[1].mxu1 }
 0x1f9   :  { %v281_v32 = vpop.f32.mrb[2].mxu1 }
 0x1fa   :  { %285 = vst [vmem:[#allocation7] sm:$0xff] %v279_v30  ;;  %v282_v33 = vadd.f32 %v315_v28, %v281_v32  ;;  %v381_v34 = vpop.f32.mrb[3].mxu1 }
 0x1fc   :  { %286 = vst [vmem:[#allocation7 + $0x8] sm:$0xff] %v282_v33 }
 0x1fd   :  { %463 = shalt.err (!%p460_p6)
}
 0x1fe   :  { %s464_s25 = scalar_lea.hbm %s569_s5, 256 }
 0x1ff   :  { %p465_p7 = scmp.ne.s32.totalorder %s569_s5, %s464_s25  ;;  %p468_p8 = scmp.lt.u32.totalorder %s464_s25, %s569_s5 }
 0x201   :  { %p470_p9 = pnand %p468_p8, %p465_p7 }
 0x203   :  { %473 = shalt.err (!%p470_p9)
}
 0x204   :  { %s487_s30 = smov 128   ;;  %s488_s6 = smov 8  }
 0x205   :  { %298 = dma.vmem_to_hbm [thread:$0]  %s293_s23, 256, %s569_s5, [#allocation4], %s487_s30, %s487_s30, %s488_s6  }
 0x206   :  { %478 = dma.done.wait [#allocation4], 256  }
 0x207   :  { %479 = vsyncadd [#allocation4], 4294967040 }
 0x208   :  { %302 = vsyncpa [#allocation3], 1 }
 0x209   :  { %303 = vsyncpa [#allocation6], 1 }
 0x20a   :  { %304 = vsyncpa [#allocation4], 1 }

// kernel: _mlp_call.1
= control target key start
LH: loop header
LB: loop body
LE: loop exit
PB: predicated region body
PF: predicated region fallthrough
CT: control target
= control target key end

     0   :  { %10 = vsyncpa [#allocation3], 0  ;;  %s564_s0 = inlined_call_operand.vmem [shape: bf16[16,128], index: 0, kind: input, shape index: {}]   ;;  %s565_s1 = inlined_call_operand.hbm [shape: bf16[128,128], index: 1, kind: input, shape index: {}]   ;;  %s566_s2 = inlined_call_operand.vmem [shape: f32[1,128], index: 2, kind: input, shape index: {}]   ;;  %s567_s3 = inlined_call_operand.hbm [shape: bf16[128,128], index: 3, kind: input, shape index: {}]   ;;  %s568_s4 = inlined_call_operand.vmem [shape: f32[1,128], index: 4, kind: input, shape index: {}]   ;;  %s569_s5 = inlined_call_operand.hbm [shape: f32[16,128], index: 5, kind: output, shape index: {}]  }
   0x1   :  { %11 = vsyncpa [#allocation6], 0 }
   0x2   :  { %12 = vsyncpa [#allocation4], 0  ;;  %s480_s18 = smov [#allocation2]   ;;  %s408_s22 = scalar_lea.hbm %s565_s1, 1024 }
   0x3   :  { %s20_s19 = sshll.u32 %s480_s18, 4  ;;  %p409_p0 = scmp.ne.s32.totalorder %s565_s1, %s408_s22  ;;  %s21_s19 = int_to_ptr.vmem [resolvable:$true] %s20_s19 }
   0x4   :  { %p412_p1 = scmp.lt.u32.totalorder %s408_s22, %s565_s1 }
   0x6   :  { %p414_p2 = pnand %p412_p1, %p409_p0 }
   0x8   :  { %417 = shalt.err (!%p414_p2)
}
   0x9   :  { %s418_s27 = scalar_lea.vmem %s21_s19, 1024  ;;  %p423_p4 = scmp.lt.s32.totalorder %s21_s19, %s21_s19 }
   0xa   :  { %p419_p3 = scmp.ne.s32.totalorder %s21_s19, %s418_s27  ;;  %p424_p5 = scmp.lt.s32.totalorder %s418_s27, %s418_s27 }
   0xc   :  { %p425_p6 = por %p424_p5, %p423_p4 }
   0xe   :  { %p426_p7 = pnand %p425_p6, %p419_p3 }
  0x10   :  { %429 = shalt.err (!%p426_p7)
}
  0x11   :  { %s481_s28 = smov 64   ;;  %s482_s29 = smov 4  }
  0x12   :  { %26 = dma.hbm_to_vmem [thread:$0]  %s565_s1, 1024, %s21_s19, [#allocation3], %s481_s28, %s481_s28, %s482_s29  }
  0x13   :  { %s483_s7 = smov [#allocation5]   ;;  %s430_s11 = scalar_lea.hbm %s567_s3, 1024 }
  0x14   :  { %s34_s8 = sshll.u32 %s483_s7, 4  ;;  %p431_p8 = scmp.ne.s32.totalorder %s567_s3, %s430_s11  ;;  %s35_s8 = int_to_ptr.vmem [resolvable:$true] %s34_s8 }
  0x15   :  { %p434_p9 = scmp.lt.u32.totalorder %s430_s11, %s567_s3 }
  0x17   :  { %p436_p10 = pnand %p434_p9, %p431_p8 }
  0x19   :  { %439 = shalt.err (!%p436_p10)
}
  0x1a   :  { %s440_s16 = scalar_lea.vmem %s35_s8, 1024  ;;  %p445_p12 = scmp.lt.s32.totalorder %s35_s8, %s35_s8 }
  0x1b   :  { %p441_p11 = scmp.ne.s32.totalorder %s35_s8, %s440_s16  ;;  %p446_p13 = scmp.lt.s32.totalorder %s440_s16, %s440_s16 }
  0x1d   :  { %p447_p0 = por %p446_p13, %p445_p12 }
  0x1f   :  { %p448_p1 = pnand %p447_p0, %p441_p11 }
  0x21   :  { %451 = shalt.err (!%p448_p1)
}
  0x22   :  { %40 = dma.hbm_to_vmem [thread:$0]  %s567_s3, 1024, %s35_s8, [#allocation6], %s481_s28, %s481_s28, %s482_s29  }
  0x23   :  { %474 = dma.done.wait [#allocation3], 1024  }
  0x24   :  { %475 = vsyncadd [#allocation3], 4294966272 }
  0x25   :  { %476 = dma.done.wait [#allocation6], 1024  }
  0x26   :  { %477 = vsyncadd [#allocation6], 4294966272  ;;  %v484_v0 = vmov 0.0   ;;  %vm485_vm0 = vmmov 0   ;;  %v391_v1 = vld [vmem:[#allocation2] sm:$0xff]   ;;  %v392_v2 = vld [vmem:[#allocation2 + $0x8] sm:$0xff]  }
  0x27   :  { %342 = vmatprep.subr.bf16.mxu0 %v484_v0  ;;  %358 = vmatprep.mubr.msk.bf16.mxu0 %vm485_vm0, %v484_v0  ;;  %v393_v3 = vld [vmem:[#allocation2 + $0x10] sm:$0xff]   ;;  %v400_v4 = vld [vmem:[#allocation5] sm:$0xff]   ;;  %v394_v5 = vld [vmem:[#allocation2 + $0x18] sm:$0xff]   ;;  %s486_s22 = smov [#allocation7]  }
  0x28   :  { %362 = vmatprep.subr.bf16.mxu1 %v484_v0  ;;  %378 = vmatprep.mubr.msk.bf16.mxu1 %vm485_vm0, %v484_v0  ;;  %v401_v6 = vld [vmem:[#allocation5 + $0x8] sm:$0xff]   ;;  %v395_v7 = vld [vmem:[#allocation2 + $0x20] sm:$0xff]   ;;  %v402_v8 = vld [vmem:[#allocation5 + $0x10] sm:$0xff]   ;;  %s292_s23 = sshll.u32 %s486_s22, 4  ;;  %s293_s23 = int_to_ptr.vmem [resolvable:$true] %s292_s23 }
  0x29   :  { %343 = vmatpush3.bf16.msra.mxu0 %v391_v1  ;;  %363 = vmatpush3.bf16.msra.mxu1 %v400_v4  ;;  %v396_v9 = vld [vmem:[#allocation2 + $0x28] sm:$0xff]   ;;  %v403_v10 = vld [vmem:[#allocation5 + $0x18] sm:$0xff]   ;;  %v397_v11 = vld [vmem:[#allocation2 + $0x30] sm:$0xff]   ;;  %p457_p3 = scmp.lt.s32.totalorder %s293_s23, %s293_s23 }
  0x2a   :  { %344 = vmatprep.subr.bf16.mxu0 %v484_v0  ;;  %364 = vmatprep.subr.bf16.mxu1 %v484_v0  ;;  %v404_v12 = vld [vmem:[#allocation5 + $0x20] sm:$0xff]   ;;  %v398_v13 = vld [vmem:[#allocation2 + $0x38] sm:$0xff]   ;;  %v405_v14 = vld [vmem:[#allocation5 + $0x28] sm:$0xff]  }
  0x2b   :  { %v399_v15 = vld [vmem:[%s564_s0] sm:$0xff]   ;;  %v406_v16 = vld [vmem:[#allocation5 + $0x30] sm:$0xff]   ;;  %v407_v17 = vld [vmem:[#allocation5 + $0x38] sm:$0xff]  }
  0x2c   :  { %v305_v18 = vld [vmem:[%s566_s2] ss:$0 sm:$0xff]  ;;  %s452_s2 = scalar_lea.vmem %s293_s23, 256 }
  0x2d   :  { %345 = vmatpush3.bf16.msra.mxu0 %v392_v2  ;;  %365 = vmatpush3.bf16.msra.mxu1 %v401_v6  ;;  %v315_v28 = vld [vmem:[%s568_s4] ss:$0 sm:$0xff]  ;;  %p453_p2 = scmp.ne.s32.totalorder %s293_s23, %s452_s2  ;;  %p458_p4 = scmp.lt.s32.totalorder %s452_s2, %s452_s2 }
  0x2e   :  { %346 = vmatprep.subr.bf16.mxu0 %v484_v0  ;;  %366 = vmatprep.subr.bf16.mxu1 %v484_v0 }
  0x2f   :  { %p459_p5 = por %p458_p4, %p457_p3 }
  0x31   :  { %347 = vmatpush3.bf16.msra.mxu0 %v393_v3  ;;  %367 = vmatpush3.bf16.msra.mxu1 %v402_v8  ;;  %p460_p6 = pnand %p459_p5, %p453_p2 }
  0x32   :  { %348 = vmatprep.subr.bf16.mxu0 %v484_v0  ;;  %368 = vmatprep.subr.bf16.mxu1 %v484_v0 }
  0x35   :  { %349 = vmatpush3.bf16.msra.mxu0 %v394_v5  ;;  %369 = vmatpush3.bf16.msra.mxu1 %v403_v10 }
  0x36   :  { %350 = vmatprep.subr.bf16.mxu0 %v484_v0  ;;  %370 = vmatprep.subr.bf16.mxu1 %v484_v0 }
  0x39   :  { %351 = vmatpush3.bf16.msra.mxu0 %v395_v7  ;;  %371 = vmatpush3.bf16.msra.mxu1 %v404_v12 }
  0x3a   :  { %352 = vmatprep.subr.bf16.mxu0 %v484_v0  ;;  %372 = vmatprep.subr.bf16.mxu1 %v484_v0 }
  0x3d   :  { %353 = vmatpush3.bf16.msra.mxu0 %v396_v9  ;;  %373 = vmatpush3.bf16.msra.mxu1 %v405_v14 }
  0x3e   :  { %354 = vmatprep.subr.bf16.mxu0 %v484_v0  ;;  %374 = vmatprep.subr.bf16.mxu1 %v484_v0 }
  0x41   :  { %355 = vmatpush3.bf16.msra.mxu0 %v397_v11  ;;  %375 = vmatpush3.bf16.msra.mxu1 %v406_v16 }
  0x42   :  { %356 = vmatprep.subr.bf16.mxu0 %v484_v0  ;;  %376 = vmatprep.subr.bf16.mxu1 %v484_v0 }
  0x45   :  { %357 = vmatpush3.bf16.msra.mxu0 %v398_v13  ;;  %377 = vmatpush3.bf16.msra.mxu1 %v407_v17 }
  0x48   :  { %359 = vmatmul.mubr.bf16.vlgmr.msra.gmra.mrb[0].mxu0 %v399_v15 }
 0x11b   :  { %v163_v19 = vpop.f32.mrb[0].mxu0 }
 0x11c   :  { %v164_v20 = vadd.f32 %v305_v18, %v163_v19  ;;  %v360_v21 = vpop.f32.mrb[1].mxu0 }
 0x11d   :  { %v166_v22 = vpop.f32.mrb[2].mxu0 }
 0x11e   :  { %v167_v23 = vadd.f32 %v305_v18, %v166_v22  ;;  %v361_v24 = vpop.f32.mrb[3].mxu0  ;;  %v170_v25 = vmax.f32 %v164_v20, 0.0 }
 0x120   :  { %v171_v26 = vmax.f32 %v167_v23, 0.0 }
 0x122   :  { %v172_v27 = vpack.c.bf16 %v171_v26, %v170_v25 }
 0x124   :  { %379 = vmatmul.mubr.bf16.vlgmr.msra.gmra.mrb[0].mxu1 %v172_v27 }
 0x1f7   :  { %v278_v29 = vpop.f32.mrb[0].mxu1 }
 0x1f8   :  { %v279_v30 = vadd.f32 %v315_v28, %v278_v29  ;;  %v380_v31 = vpop.f32.mrb[1].mxu1 }
 0x1f9   :  { %v281_v32 = vpop.f32.mrb[2].mxu1 }
 0x1fa   :  { %285 = vst [vmem:[#allocation7] sm:$0xff] %v279_v30  ;;  %v282_v33 = vadd.f32 %v315_v28, %v281_v32  ;;  %v381_v34 = vpop.f32.mrb[3].mxu1 }
 0x1fc   :  { %286 = vst [vmem:[#allocation7 + $0x8] sm:$0xff] %v282_v33 }
 0x1fd   :  { %463 = shalt.err (!%p460_p6)
}
 0x1fe   :  { %s464_s25 = scalar_lea.hbm %s569_s5, 256 }
 0x1ff   :  { %p465_p7 = scmp.ne.s32.totalorder %s569_s5, %s464_s25  ;;  %p468_p8 = scmp.lt.u32.totalorder %s464_s25, %s569_s5 }
 0x201   :  { %p470_p9 = pnand %p468_p8, %p465_p7 }
 0x203   :  { %473 = shalt.err (!%p470_p9)
}
 0x204   :  { %s487_s30 = smov 128   ;;  %s488_s6 = smov 8  }
 0x205   :  { %298 = dma.vmem_to_hbm [thread:$0]  %s293_s23, 256, %s569_s5, [#allocation4], %s487_s30, %s487_s30, %s488_s6  }
 0x206   :  { %478 = dma.done.wait [#allocation4], 256  }
 0x207   :  { %479 = vsyncadd [#allocation4], 4294967040 }
 0x208   :  { %302 = vsyncpa [#allocation3], 1 }
 0x209   :  { %303 = vsyncpa [#allocation6], 1 }
 0x20a   :  { %304 = vsyncpa [#allocation4], 1 }

</bundles_post_ra>
